<compile_context>
chip_gen: v7x
topology: tpu7x:2x2x1
jax: 0.10.0
libtpu: 0.0.40
codegen_flags: <defaults>
</compile_context>

<pallas_src>
import jax
import jax.numpy as jnp
from jax.experimental import pallas as pl
from jax.experimental.pallas import tpu as pltpu


def _locked_dropout_kernel(x_ref, m_ref, o_ref):
    # Pure HBM-bound streaming multiply: (t_tile, BH_pad) * (1, BH_pad).
    # Mask thresholding/scaling is hoisted to the wrapper.
    o_ref[...] = x_ref[...] * m_ref[...]


def locked_dropout(x, seed, p=0.5, training=True, *,
                   target_tile_bytes=8 * 1024 * 1024):
    """JAX/Pallas equivalent of LockedDropout.forward (x: (T, B, H))."""
    if not training or p == 0.0:
        return x
    if not (0.0 <= p < 1.0):
        raise ValueError("p must be in [0, 1) for the Pallas path")

    T, B, H = x.shape
    BH = B * H
    keep_prob = 1.0 - p
    scale = 1.0 / keep_prob

    # One locked (1, B*H) mask per call, precomputed in x's dtype so the
    # kernel body does no per-tile compare/select work.
    key = jax.random.PRNGKey(seed)
    u = jax.random.uniform(key, (1, BH), dtype=jnp.float32)
    mask = jnp.where(
        u < jnp.float32(keep_prob), jnp.float32(scale), jnp.float32(0.0)
    ).astype(x.dtype)

    itemsize = jnp.dtype(x.dtype).itemsize
    # dtype-aware sublane alignment: 8 (f32), 16 (bf16/f16), 32 (int8/fp8).
    sub = max(8, 32 // itemsize)

    row_bytes = BH * itemsize
    t_tile = (target_tile_bytes // max(row_bytes, 1) // sub) * sub
    t_tile = max(sub, t_tile)

    if t_tile >= T:
        # Whole array fits in one block: a 1-step grid gets no pipelining,
        # pays full launch overhead and uses one TC on v7x -> plain JAX is
        # already at roofline for tiny arrays.
        return (x.reshape(T, BH) * mask).reshape(T, B, H)

    # Lane-pad B*H up to a multiple of 128 so stores are unmasked vst.
    BH_pad = ((BH + 127) // 128) * 128
    x2 = x.reshape(T, BH)
    m2 = mask
    if BH_pad != BH:
        x2 = jnp.pad(x2, ((0, 0), (0, BH_pad - BH)))
        m2 = jnp.pad(m2, ((0, 0), (0, BH_pad - BH)))

    grid = (pl.cdiv(T, t_tile),)

    tile_bytes = t_tile * BH_pad * itemsize
    mask_bytes = BH_pad * itemsize
    # 2x in + 2x out double-buffered tiles + mask + slack; cap at 56 MiB to
    # stay under v7x's 64 MiB physical VMEM (v5e/v6e have 128 MiB physical).
    vmem_limit = int(min(56 * 1024 * 1024,
                         max(32 * 1024 * 1024,
                             4 * tile_bytes + 4 * mask_bytes + (2 << 20))))

    out2 = pl.pallas_call(
        _locked_dropout_kernel,
        out_shape=jax.ShapeDtypeStruct((T, BH_pad), x.dtype),
        grid=grid,
        in_specs=[
            pl.BlockSpec((t_tile, BH_pad), lambda i: (i, 0)),  # x tile over T
            pl.BlockSpec((1, BH_pad), lambda i: (0, 0)),       # locked mask
        ],
        out_specs=pl.BlockSpec((t_tile, BH_pad), lambda i: (i, 0)),
        compiler_params=pltpu.CompilerParams(
            dimension_semantics=("parallel",),  # independent T tiles
            vmem_limit_bytes=vmem_limit,
        ),
    )(x2, m2)

    if BH_pad != BH:
        out2 = out2[:, :BH]
    return out2.reshape(T, B, H)


def _check_semantics(x, out, p):
    """LockedDropout invariants: kept = x/(1-p), dropped = 0, mask locked over T."""
    scale = 1.0 / (1.0 - p)
    ratio = out / jnp.where(x == 0.0, 1.0, x)  # per-element effective multiplier
    assert out.shape == x.shape and out.dtype == x.dtype
    kept = jnp.abs(ratio - scale) < 1e-4
    dropped = jnp.abs(ratio) < 1e-4
    assert bool(jnp.all(kept | dropped))
    assert bool(jnp.all(kept == kept[0:1]))  # same mask for every t


if __name__ == "__main__":
    key = jax.random.PRNGKey(0)
    p = 0.5

    # --- Main test: exercises the tiled Pallas path (multi-step grid) ------
    T, B, H = 32, 4, 32            # (seq, batch, hidden) -- small shapes
    x = jax.random.normal(key, (T, B, H), dtype=jnp.float32)
    # Force small tiles so the grid has >= 2 steps even at this tiny shape.
    out = jax.block_until_ready(
        locked_dropout(x, seed=1234, p=p, training=True,
                       target_tile_bytes=4096))
    _check_semantics(x, out, p)

    # Default-tile path collapses to the plain-JAX fallback for this shape;
    # same seed must give a bit-identical result.
    out_fb = jax.block_until_ready(
        locked_dropout(x, seed=1234, p=p, training=True))
    assert bool(jnp.all(out_fb == out))

    # --- Lane-padding test: B*H not a multiple of 128 ----------------------
    T2, B2, H2 = 32, 4, 33         # BH = 132 -> padded to 256 lanes
    x2 = jax.random.normal(jax.random.PRNGKey(1), (T2, B2, H2),
                           dtype=jnp.float32)
    out2 = jax.block_until_ready(
        locked_dropout(x2, seed=99, p=p, training=True,
                       target_tile_bytes=8192))
    _check_semantics(x2, out2, p)

    # --- Eval / p=0 path returns x unchanged --------------------------------
    out_eval = jax.block_until_ready(
        locked_dropout(x, seed=1234, p=p, training=False))
    assert bool(jnp.all(out_eval == x))
    out_p0 = jax.block_until_ready(
        locked_dropout(x, seed=1234, p=0.0, training=True))
    assert bool(jnp.all(out_p0 == x))

    print("KERNEL_OK")
</pallas_src>

<mosaic_0001>
module attributes {stable_mosaic.version = 11 : i64} {
  func.func @_locked_dropout_kernel(%arg0: i32, %arg1: memref<8x128xf32, #tpu.memory_space<vmem>>, %arg2: memref<1x128xf32, #tpu.memory_space<vmem>>, %arg3: memref<8x128xf32, #tpu.memory_space<vmem>>) attributes {dimension_semantics = [#tpu.dimension_semantics<parallel>], iteration_bounds = array<i64: 4>, scalar_prefetch = 0 : i64, scratch_operands = 0 : i64, tpu.core_type = #tpu.core_type<tc>, window_params = [{transform_indices = @transform_0, window_bounds = array<i64: 8, 128>}, {pipeline_mode = #tpu.pipeline_mode<synchronous>, transform_indices = @transform_1, window_bounds = array<i64: 1, 128>}, {transform_indices = @transform_2, window_bounds = array<i64: 8, 128>}]} {
    %c0 = arith.constant 0 : index
    %c0_0 = arith.constant 0 : index
    %0 = vector.load %arg1[%c0, %c0_0] : memref<8x128xf32, #tpu.memory_space<vmem>>, vector<8x128xf32>
    %c0_1 = arith.constant 0 : index
    %c0_2 = arith.constant 0 : index
    %1 = vector.load %arg2[%c0_1, %c0_2] : memref<1x128xf32, #tpu.memory_space<vmem>>, vector<1x128xf32>
    %2 = vector.broadcast %1 : vector<1x128xf32> to vector<8x128xf32>
    %3 = arith.mulf %0, %2 : vector<8x128xf32>
    %c0_3 = arith.constant 0 : index
    %c0_4 = arith.constant 0 : index
    %4 = vector.load %arg3[%c0_3, %c0_4] : memref<8x128xf32, #tpu.memory_space<vmem>>, vector<8x128xf32>
    tpu.vector_store %arg3[%c0_3, %c0_4], %3 {strides = array<i32>} : memref<8x128xf32, #tpu.memory_space<vmem>>, vector<8x128xf32>,
    return
  }
  func.func @transform_0(%arg0: i32) -> (i32, i32) {
    %c0_i32 = arith.constant 0 : i32
    %c0_i32_0 = arith.constant 0 : i32
    return %arg0, %c0_i32 : i32, i32
  }
  func.func @transform_1(%arg0: i32) -> (i32, i32) {
    %c0_i32 = arith.constant 0 : i32
    %c0_i32_0 = arith.constant 0 : i32
    %c0_i32_1 = arith.constant 0 : i32
    return %c0_i32, %c0_i32_0 : i32, i32
  }
  func.func @transform_2(%arg0: i32) -> (i32, i32) {
    %c0_i32 = arith.constant 0 : i32
    %c0_i32_0 = arith.constant 0 : i32
    return %arg0, %c0_i32 : i32, i32
  }
}

</mosaic_0001>

<bundles_post_ra>
// kernel: tpu_custom_call.1
= control target key start
LH: loop header
LB: loop body
LE: loop exit
PB: predicated region body
PF: predicated region fallthrough
CT: control target
= control target key end

     0   :  { %7 = vsyncpa [#allocation3], 0  ;;  %s589_s0 = inlined_call_operand.hbm [shape: f32[32,128], index: 0, kind: input, shape index: {}]   ;;  %s590_s1 = inlined_call_operand.vmem [shape: f32[1,128], index: 1, kind: input, shape index: {}]   ;;  %s591_s2 = inlined_call_operand.hbm [shape: f32[32,128], index: 2, kind: output, shape index: {}]  }
   0x1   :  { %9 = vsyncpa [#allocation3 + $0x1], 0 }
   0x2   :  { %10 = vsyncpa [#allocation4], 0 }
   0x3   :  { %12 = vsyncpa [#allocation4 + $0x1], 0  ;;  %s427_s9 = smov 0   ;;  %s429_s10 = smov 0  }
   0x4   :  { %s431_s11 = smov 0   ;;  %s433_s12 = smov 0  }
   0x5 LB: > { %s448_s13 = sadd.s32 4294967295, %s408_s12   ;;  %s253_s14 = sadd.s32 4294967294, %s408_s12   ;;  %s408_s12 = sphi %s433_s12, %s605_s12   ;;  %s404_s11 = sphi %s431_s11, %s604_s11   ;;  %s400_s10 = sphi %s429_s10, %s603_s10   ;;  %s396_s9 = sphi %s427_s9, %s602_s9  }
   0x6   : > { %s452_s15 = sadd.s32 1, %s408_s12   ;;  %s25_s16 = sadd.s32 1, %s404_s11 }
   0x7   : > { %s22_s17 = ssub.s32 %s408_s12, %s452_s15  ;;  %p32_p0 = scmp.ne.s32.totalorder %s404_s11, %s400_s10 }
   0x8   : > { %p23_p1 = scmp.eq.s32.totalorder %s22_s17, 0  ;;  %p33_p2 = scmp.eq.s32.totalorder %s408_s12, 0 }
   0x9   : > { %p38_p3 = scmp.ne.s32.totalorder %s400_s10, %s396_s9  ;;  %p39_p4 = scmp.eq.s32.totalorder %s448_s13, 0 }
   0xa   : > { %s464_s18 = scalar_select %p23_p1, %s404_s11, %s25_s16  }
   0xb   : > { %p466_p5 = por %p33_p2, %p32_p0  ;;  %p470_p6 = por %p39_p4, %p38_p3 }
   0xc   : > { %p83_p7 = scmp.eq.s32.totalorder %s448_s13, 3  ;;  %p89_p8 = scmp.eq.s32.totalorder %s253_s14, 3 }
   0xd   : > { %p278_p9 = scmp.lt.s32.totalorder %s408_s12, 4  ;;  %s112_s23 = sand.u32 1, %s404_s11  }
   0xe   : > { %p476_p10 = por %p83_p7, %p32_p0  ;;  %p480_p11 = por %p89_p8, %p38_p3 }
   0xf   : > { %s257_s24 = sshll.u32 %s408_s12, 7  ;;  %s256_s25 = sshll.u32 %s112_s23, 3 }
  0x10   : > { %s595_s21 = scalar_select %p476_p10, 1, 0 }
  0x11   : > { %s596_s22 = scalar_select %p480_p11, 1, 0 }
  0x12   : > { %s489_s28 = scalar_lea.hbm %s589_s0, %s257_s24  ;;  %s116_s29 = scalar_lea.vmem [#allocation2], %s256_s25 }
  0x13   : > { %s123_s30 = sshll.u32 %s116_s29, 4  ;;  %p493_p12 = pnand %p278_p9, %p466_p5  ;;  %s497_s30 = int_to_ptr.vmem [resolvable:$true] %s123_s30 }
  0x14   : > { %s113_s4 = scalar_lea.sflag [#allocation3], %s112_s23  ;;  %s312_s5 = scalar_lea.hbm %s489_s28, 128 }
  0x15   : > { %p313_p1 = scmp.ne.s32.totalorder %s489_s28, %s312_s5  ;;  %p314_p2 = pneg %p493_p12 }
  0x16   : > { %s317_s8 = scalar_lea.hbm %s589_s0, 512  ;;  %p318_p5 = scmp.lt.u32.totalorder %s489_s28, %s589_s0 }
  0x17   : > { %p315_p3 = pnand %p314_p2, %p313_p1  ;;  %p319_p7 = scmp.lt.u32.totalorder %s317_s8, %s312_s5 }
  0x18   : > { %p321_p9 = scmp.lt.u32.totalorder %s312_s5, %s489_s28 }
  0x19   : > { %p316_p4 = pneg %p315_p3  ;;  %p320_p8 = por %p319_p7, %p318_p5 }
  0x1b   : > { %p322_p13 = por %p321_p9, %p320_p8 }
  0x1d   : > { %p323_p0 = pnand %p322_p13, %p316_p4 }
  0x1f   : > { %326 = shalt.err (!%p323_p0)
}
  0x20   : > { %s327_s17 = scalar_lea.vmem %s497_s30, 128  ;;  %s410_s19 = smov [#allocation2]  }
  0x21   : > { %p328_p1 = scmp.ne.s32.totalorder %s497_s30, %s327_s17  ;;  %s332_s23 = sshll.u32 %s410_s19, 4  ;;  %s333_s23 = int_to_ptr.vmem [resolvable:$false] %s332_s23 }
  0x22   : > { %s334_s24 = scalar_lea.vmem %s333_s23, 256  ;;  %p335_p10 = scmp.lt.s32.totalorder %s497_s30, %s333_s23 }
  0x23   : > { %p330_p3 = pnand %p328_p1, %p314_p2  ;;  %p336_p5 = scmp.lt.s32.totalorder %s334_s24, %s327_s17 }
  0x25   : > { %p331_p11 = pneg %p330_p3  ;;  %p337_p7 = por %p336_p5, %p335_p10 }
  0x27   : > { %p338_p8 = pnand %p337_p7, %p331_p11 }
  0x29   : > { %341 = shalt.err (!%p338_p8)
}
  0x2a   : > { %273 = dma.hbm_to_vmem [thread:$0]  (!%p493_p12), %s489_s28, 128, %s497_s30, %s113_s4  }
  0x2b   : > { %p598_p13 = scmp.lt.s32.totalorder %s408_s12, 5  ;;  %p599_p0 = scmp.ge.s32.totalorder %s408_s12, 1 }
  0x2d   : > { %p129_p2 = pnand %p599_p0, %p598_p13 }
  0x2e   : > { %s531_s25 = sand.u32 (!%p129_p2), 1, %s400_s10  }
  0x2f   : > { %132 = sbr.rel (%p129_p2) target bundleno = 81 (0x51), region = 28  ;;  %s259_s26 = sshll.u32 (!%p129_p2), %s531_s25, 3 }
  0x30   : > { %s135_s27 = scalar_lea.sflag (!%p129_p2), [#allocation3], %s531_s25  ;;  %s138_s29 = scalar_lea.vmem (!%p129_p2), [#allocation2], %s259_s26 }
  0x36   : > { %387 = dma.done.wait (%p470_p6), %s135_s27, 128  }
  0x37   : > { %389 = vsyncadd (%p470_p6), %s135_s27, 4294967168  ;;  %s158_s28 = scalar_lea.vmem [#allocation5], %s259_s26  ;;  %s263_s3 = sshll.u32 %s448_s13, 7  ;;  %v159_v0 = vld [vmem:[%s138_s29] sm:$0xff] }
  0x38   : > { %s183_s30 = sshll.u32 %s158_s28, 4  ;;  %v261_v1 = vld [vmem:[%s590_s1] ss:$0 sm:$0xff]  ;;  %s548_s20 = scalar_lea.hbm %s591_s2, %s263_s3  ;;  %s543_s30 = int_to_ptr.vmem [resolvable:$true] %s183_s30 }
  0x39   : > { %v167_v2 = vmul.f32 %v261_v1, %v159_v0  ;;  %s170_s8 = scalar_lea.sflag [#allocation4], %s531_s25  ;;  %s342_s14 = scalar_lea.vmem %s543_s30, 128 }
  0x3a   : > { %p343_p6 = scmp.ne.s32.totalorder %s543_s30, %s342_s14  ;;  %p600_p10 = scmp.ne.s32.totalorder %s595_s21, 0 }
  0x3b   : > { %168 = vst [vmem:[%s158_s28] sm:$0xff] %v167_v2  ;;  %s411_s13 = smov [#allocation5]  }
  0x3c   : > { %p344_p11 = pnand %p343_p6, %p600_p10  ;;  %s346_s16 = sshll.u32 %s411_s13, 4  ;;  %s347_s16 = int_to_ptr.vmem [resolvable:$false] %s346_s16 }
  0x3d   : > { %s348_s17 = scalar_lea.vmem %s347_s16, 256  ;;  %p349_p4 = scmp.lt.s32.totalorder %s543_s30, %s347_s16 }
  0x3e   : > { %p345_p12 = pneg %p344_p11  ;;  %p350_p9 = scmp.lt.s32.totalorder %s348_s17, %s342_s14 }
  0x40   : > { %p351_p1 = por %p350_p9, %p349_p4 }
  0x42   : > { %p352_p3 = pnand %p351_p1, %p345_p12 }
  0x44   : > { %355 = shalt.err (!%p352_p3)
}
  0x45   : > { %s356_s19 = scalar_lea.hbm %s548_s20, 128  ;;  %s360_s25 = scalar_lea.hbm %s591_s2, 512 }
  0x46   : > { %p357_p5 = scmp.ne.s32.totalorder %s548_s20, %s356_s19  ;;  %p361_p13 = scmp.lt.u32.totalorder %s548_s20, %s591_s2 }
  0x47   : > { %p362_p0 = scmp.lt.u32.totalorder %s360_s25, %s356_s19  ;;  %p364_p6 = scmp.lt.u32.totalorder %s356_s19, %s548_s20 }
  0x48   : > { %p358_p7 = pnand %p357_p5, %p600_p10 }
  0x49   : > { %p363_p2 = por %p362_p0, %p361_p13 }
  0x4a   : > { %p359_p8 = pneg %p358_p7 }
  0x4b   : > { %p365_p11 = por %p364_p6, %p363_p2 }
  0x4d   : > { %p366_p12 = pnand %p365_p11, %p359_p8 }
  0x4f   : > { %369 = shalt.err (!%p366_p12)
}
  0x50   : > { %268 = dma.vmem_to_hbm [thread:$0]  (%p600_p10), %s543_s30, 128, %s548_s20, %s170_s8  }
  0x51 PF: > { %p279_p4 = scmp.ge.s32.totalorder %s408_s12, 2  ;;  %s195_s29 = sand.u32 1, %s396_s9  }
  0x52   : > { %p601_p9 = scmp.ne.s32.totalorder %s596_s22, 0  ;;  %s196_s28 = scalar_lea.sflag [#allocation4], %s195_s29 }
  0x54   : > { %p275_p1 = pnand %p279_p4, %p601_p9 }
  0x56   : > { %391 = dma.done.wait (!%p275_p1), %s196_s28, 128  }
  0x57   : > { %393 = vsyncadd (!%p275_p1), %s196_s28, 4294967168  ;;  %p15_p3 = scmp.ge.s32.totalorder %s452_s15, 6   ;;  %s602_s9 = smov %s400_s10 }
  0x58   : > { %s603_s10 = smov %s404_s11  ;;  %s604_s11 = smov %s464_s18 }
  0x59   : > { %s605_s12 = smov %s452_s15  ;;  %17 = sbr.rel (!%p15_p3) target bundleno = 5 (0x5), region = 73 }
  0x60   :  { %201 = vsyncpa [#allocation3], 1 }
  0x61   :  { %203 = vsyncpa [#allocation3 + $0x1], 1 }
  0x62   :  { %204 = vsyncpa [#allocation4], 1 }
  0x63   :  { %206 = vsyncpa [#allocation4 + $0x1], 1 }

</bundles_post_ra>
